<compile_context>
chip_gen: v6e
topology: v6e:2x2x1
jax: 0.10.0
libtpu: 0.0.40
codegen_flags: <defaults>
</compile_context>

<pallas_src>
import jax
import jax.numpy as jnp
from jax.experimental import pallas as pl
from jax.experimental.pallas import tpu as pltpu


MNIST_PIXELS = 28 * 28   # 784, flattened input width
HIDDEN = 32
HIDDEN_PAD = 128         # lane-aligned padded hidden width
CLASSES = 10
CLASSES_PAD = 128        # lane-dense output width (unmasked vector stores)
TILE_M = 1024            # row tile (review: 1024-2048; 1024 is safe on v5e's
                         # 16 MiB default scoped VMEM, fine on v6e/v7x)
NEG_BIG = -1.0e30        # bias pad for unused logit columns: never wins the
                         # max, exp() underflows to exactly 0 -> softmax exact


# ----------------------------- Pallas kernel -------------------------------

def _ffnn_kernel(x_ref, w1_ref, b1_ref, w2_ref, b2_ref, w3_ref, b3_ref, o_ref):
    # x : (TM, 784)                w1: (784, 128)   b1: (1, 128) f32
    # w2: (128, 128)  b2: (1,128)  w3: (128, 128)   b3: (1, 128) f32 (cols>=10 = -1e30)
    # o : (TM, 128) f32 log-probs; columns >= 10 are junk and sliced off outside.
    # Padded hidden columns carry zero weights/biases -> contribute exactly 0.
    x = x_ref[...]
    h1 = jnp.dot(x, w1_ref[...], preferred_element_type=jnp.float32) + b1_ref[...]
    h1 = jnp.maximum(h1, 0.0).astype(w2_ref.dtype)
    h2 = jnp.dot(h1, w2_ref[...], preferred_element_type=jnp.float32) + b2_ref[...]
    h2 = jnp.maximum(h2, 0.0).astype(w3_ref.dtype)
    z = jnp.dot(h2, w3_ref[...], preferred_element_type=jnp.float32) + b3_ref[...]
    # numerically stable log-softmax over the (lane-dense, -1e30-padded) class dim
    m = jnp.max(z, axis=-1, keepdims=True)
    e = jnp.exp(z - m)
    s = jnp.sum(e, axis=-1, keepdims=True)
    o_ref[...] = (z - m) - jnp.log(s)


def _ffnn_pallas(xf, w1, b1, w2, b2, w3, b3, tm):
    batch = xf.shape[0]
    grid = (pl.cdiv(batch, tm),)          # partial last block handled by Pallas

    x_bytes = jnp.dtype(xf.dtype).itemsize
    w_bytes = sum(int(a.size) * jnp.dtype(a.dtype).itemsize
                  for a in (w1, b1, w2, b2, w3, b3))
    cost = pl.CostEstimate(
        flops=2 * batch * (MNIST_PIXELS * HIDDEN_PAD
                           + HIDDEN_PAD * HIDDEN_PAD
                           + HIDDEN_PAD * CLASSES_PAD),
        transcendentals=batch * (CLASSES_PAD + 1),          # exp row + log
        bytes_accessed=batch * (MNIST_PIXELS * x_bytes + CLASSES_PAD * 4) + w_bytes,
    )

    def resident(arr):
        # full-array block, constant index -> stays VMEM-resident across steps
        return pl.BlockSpec(arr.shape, lambda i: (0, 0))

    return pl.pallas_call(
        _ffnn_kernel,
        out_shape=jax.ShapeDtypeStruct((batch, CLASSES_PAD), jnp.float32),
        grid=grid,
        in_specs=[
            pl.BlockSpec((tm, MNIST_PIXELS), lambda i: (i, 0)),
            resident(w1), resident(b1),
            resident(w2), resident(b2),
            resident(w3), resident(b3),
        ],
        out_specs=pl.BlockSpec((tm, CLASSES_PAD), lambda i: (i, 0)),
        compiler_params=pltpu.CompilerParams(
            dimension_semantics=("parallel",),
            vmem_limit_bytes=32 * 1024 * 1024,
        ),
        cost_estimate=cost,
    )(xf, w1, b1, w2, b2, w3, b3)


# ------------------------------ Param prep ---------------------------------

def init_params(seed=0):
    """Torch-layout params: Linear weight (out, in), uniform +/- 1/sqrt(fan_in)."""
    key = jax.random.PRNGKey(seed)
    k1, k2, k3, k4, k5, k6 = jax.random.split(key, 6)

    def u(k, shape, fan_in):
        bound = 1.0 / jnp.sqrt(jnp.float32(fan_in))
        return jax.random.uniform(k, shape, jnp.float32, -bound, bound)

    return {
        "fc1_w": u(k1, (HIDDEN, MNIST_PIXELS), MNIST_PIXELS),
        "fc1_b": u(k2, (HIDDEN,), MNIST_PIXELS),
        "fc2_w": u(k3, (HIDDEN, HIDDEN), HIDDEN),
        "fc2_b": u(k4, (HIDDEN,), HIDDEN),
        "fc3_w": u(k5, (CLASSES, HIDDEN), HIDDEN),
        "fc3_b": u(k6, (CLASSES,), HIDDEN),
    }


def prepare_params(params, compute_dtype=jnp.float32):
    """One-time layout prep (hoisted out of the forward pass):
      * transpose torch (out,in) weights to (in,out),
      * zero-pad the hidden width 32 -> 128 (exact: pads contribute 0),
      * pad the class width 10 -> 128 with zero weights and -1e30 biases so the
        lane-dense log-softmax is exact over the 10 real classes,
      * cast weights/activations to `compute_dtype` (bf16 is the big v5e lever
        and a DMA win everywhere); biases stay f32 (added to f32 accumulators).
    """
    pad_h = HIDDEN_PAD - HIDDEN
    pad_c = CLASSES_PAD - CLASSES
    w1 = jnp.pad(params["fc1_w"].T, ((0, 0), (0, pad_h))).astype(compute_dtype)   # (784,128)
    b1 = jnp.pad(params["fc1_b"].reshape(1, HIDDEN),
                 ((0, 0), (0, pad_h))).astype(jnp.float32)                          # (1,128)
    w2 = jnp.pad(params["fc2_w"].T, ((0, pad_h), (0, pad_h))).astype(compute_dtype)  # (128,128)
    b2 = jnp.pad(params["fc2_b"].reshape(1, HIDDEN),
                 ((0, 0), (0, pad_h))).astype(jnp.float32)                          # (1,128)
    w3 = jnp.pad(params["fc3_w"].T, ((0, pad_h), (0, pad_c))).astype(compute_dtype)  # (128,128)
    b3 = jnp.pad(params["fc3_b"].reshape(1, CLASSES), ((0, 0), (0, pad_c)),
                 constant_values=NEG_BIG).astype(jnp.float32)                       # (1,128)
    return (w1, b1, w2, b2, w3, b3)


# ------------------------------- Forward -----------------------------------

def _round_up(n, m):
    return ((n + m - 1) // m) * m


def _select_tm(batch, align):
    """Row tile: capped at TILE_M (VMEM budget); for small/medium batches pick
    ~B/2 (aligned) so the grid has >= 2 steps and both v7x TensorCores get work."""
    if batch > 2 * TILE_M:
        return TILE_M
    return min(TILE_M, max(align, _round_up(-(-batch // 2), align)))


def mnist_ffnn_forward(x, prepared):
    """x: (B, 28, 28) (or any (B, ...) with prod 784) -> log-probs (B, 10)."""
    w1, b1, w2, b2, w3, b3 = prepared
    batch = x.shape[0]
    compute_dtype = w1.dtype
    align = 16 if compute_dtype == jnp.bfloat16 else 8
    xf = jnp.reshape(x, (batch, MNIST_PIXELS)).astype(compute_dtype)   # nn.Flatten()
    tm = _select_tm(batch, align)
    out = _ffnn_pallas(xf, w1, b1, w2, b2, w3, b3, tm)   # (B, 128)
    return out[:, :CLASSES]


def _reference_forward(x, params):
    """Pure-JAX reference (torch semantics) for correctness checking."""
    batch = x.shape[0]
    h = jnp.reshape(x, (batch, MNIST_PIXELS)).astype(jnp.float32)
    h = jnp.maximum(h @ params["fc1_w"].T + params["fc1_b"], 0.0)
    h = jnp.maximum(h @ params["fc2_w"].T + params["fc2_b"], 0.0)
    z = h @ params["fc3_w"].T + params["fc3_b"]
    return jax.nn.log_softmax(z, axis=-1)


if __name__ == "__main__":
    params = init_params(seed=0)
    fwd = jax.jit(mnist_ffnn_forward)

    # --- f32 path (exact torch semantics), batch = 2 -------------------------
    prepared_f32 = prepare_params(params, compute_dtype=jnp.float32)
    x = jax.random.normal(jax.random.PRNGKey(0), (2, 28, 28), dtype=jnp.float32)
    out = jax.block_until_ready(fwd(x, prepared_f32))
    assert out.shape == (2, CLASSES)
    assert jnp.allclose(jnp.sum(jnp.exp(out), axis=1), 1.0, atol=1e-4)
    ref = _reference_forward(x, params)
    assert jnp.allclose(out, ref, atol=1e-4, rtol=1e-4)

    # --- unaligned batch (exercises partial last block + 2 grid steps) -------
    x2 = jax.random.normal(jax.random.PRNGKey(1), (37, 28, 28), dtype=jnp.float32)
    out2 = jax.block_until_ready(fwd(x2, prepared_f32))
    assert out2.shape == (37, CLASSES)
    assert jnp.allclose(out2, _reference_forward(x2, params), atol=1e-4, rtol=1e-4)

    # --- bf16 compute path (v5e lever / DMA win; f32 accumulation) -----------
    prepared_bf16 = prepare_params(params, compute_dtype=jnp.bfloat16)
    out3 = jax.block_until_ready(fwd(x2, prepared_bf16))
    assert out3.shape == (37, CLASSES)
    assert jnp.allclose(jnp.sum(jnp.exp(out3), axis=1), 1.0, atol=1e-3)
    assert jnp.allclose(out3, _reference_forward(x2, params), atol=1e-1)

    print("KERNEL_OK")
</pallas_src>

<mosaic_0001>
module attributes {stable_mosaic.version = 11 : i64} {
  func.func @_ffnn_kernel(%arg0: i32, %arg1: memref<8x784xf32, #tpu.memory_space<vmem>>, %arg2: memref<784x128xf32, #tpu.memory_space<vmem>>, %arg3: memref<1x128xf32, #tpu.memory_space<vmem>>, %arg4: memref<128x128xf32, #tpu.memory_space<vmem>>, %arg5: memref<1x128xf32, #tpu.memory_space<vmem>>, %arg6: memref<128x128xf32, #tpu.memory_space<vmem>>, %arg7: memref<1x128xf32, #tpu.memory_space<vmem>>, %arg8: memref<8x128xf32, #tpu.memory_space<vmem>>) attributes {dimension_semantics = [#tpu.dimension_semantics<parallel>], iteration_bounds = array<i64: 1>, scalar_prefetch = 0 : i64, scratch_operands = 0 : i64, tpu.core_type = #tpu.core_type<tc>, window_params = [{transform_indices = @transform_0, window_bounds = array<i64: 8, 784>}, {pipeline_mode = #tpu.pipeline_mode<synchronous>, transform_indices = @transform_1, window_bounds = array<i64: 784, 128>}, {pipeline_mode = #tpu.pipeline_mode<synchronous>, transform_indices = @transform_2, window_bounds = array<i64: 1, 128>}, {pipeline_mode = #tpu.pipeline_mode<synchronous>, transform_indices = @transform_3, window_bounds = array<i64: 128, 128>}, {pipeline_mode = #tpu.pipeline_mode<synchronous>, transform_indices = @transform_4, window_bounds = array<i64: 1, 128>}, {pipeline_mode = #tpu.pipeline_mode<synchronous>, transform_indices = @transform_5, window_bounds = array<i64: 128, 128>}, {pipeline_mode = #tpu.pipeline_mode<synchronous>, transform_indices = @transform_6, window_bounds = array<i64: 1, 128>}, {transform_indices = @transform_7, window_bounds = array<i64: 8, 128>}]} {
    %c0 = arith.constant 0 : index
    %c0_0 = arith.constant 0 : index
    %0 = vector.load %arg1[%c0, %c0_0] : memref<8x784xf32, #tpu.memory_space<vmem>>, vector<8x784xf32>
    %c0_1 = arith.constant 0 : index
    %c0_2 = arith.constant 0 : index
    %1 = vector.load %arg2[%c0_1, %c0_2] : memref<784x128xf32, #tpu.memory_space<vmem>>, vector<784x128xf32>
    %cst = arith.constant dense<0.000000e+00> : vector<8x128xf32>
    %2 = tpu.matmul %0, %1, %cst {dimension_numbers = #tpu.dot_dimension_numbers<[1], [0], [0], [1], [0, 0, 1, 1], [], []>} : vector<8x784xf32>, vector<784x128xf32>, vector<8x128xf32> -> vector<8x128xf32>
    %c0_3 = arith.constant 0 : index
    %c0_4 = arith.constant 0 : index
    %3 = vector.load %arg3[%c0_3, %c0_4] : memref<1x128xf32, #tpu.memory_space<vmem>>, vector<1x128xf32>
    %4 = vector.broadcast %3 : vector<1x128xf32> to vector<8x128xf32>
    %5 = arith.addf %2, %4 : vector<8x128xf32>
    %cst_5 = arith.constant 0.000000e+00 : f32
    %6 = vector.broadcast %cst_5 : f32 to vector<8x128xf32>
    %7 = arith.maximumf %5, %6 : vector<8x128xf32>
    %c0_6 = arith.constant 0 : index
    %c0_7 = arith.constant 0 : index
    %8 = vector.load %arg4[%c0_6, %c0_7] : memref<128x128xf32, #tpu.memory_space<vmem>>, vector<128x128xf32>
    %cst_8 = arith.constant dense<0.000000e+00> : vector<8x128xf32>
    %9 = tpu.matmul %7, %8, %cst_8 {dimension_numbers = #tpu.dot_dimension_numbers<[1], [0], [0], [1], [0, 0, 1, 1], [], []>} : vector<8x128xf32>, vector<128x128xf32>, vector<8x128xf32> -> vector<8x128xf32>
    %c0_9 = arith.constant 0 : index
    %c0_10 = arith.constant 0 : index
    %10 = vector.load %arg5[%c0_9, %c0_10] : memref<1x128xf32, #tpu.memory_space<vmem>>, vector<1x128xf32>
    %11 = vector.broadcast %10 : vector<1x128xf32> to vector<8x128xf32>
    %12 = arith.addf %9, %11 : vector<8x128xf32>
    %cst_11 = arith.constant 0.000000e+00 : f32
    %13 = vector.broadcast %cst_11 : f32 to vector<8x128xf32>
    %14 = arith.maximumf %12, %13 : vector<8x128xf32>
    %c0_12 = arith.constant 0 : index
    %c0_13 = arith.constant 0 : index
    %15 = vector.load %arg6[%c0_12, %c0_13] : memref<128x128xf32, #tpu.memory_space<vmem>>, vector<128x128xf32>
    %cst_14 = arith.constant dense<0.000000e+00> : vector<8x128xf32>
    %16 = tpu.matmul %14, %15, %cst_14 {dimension_numbers = #tpu.dot_dimension_numbers<[1], [0], [0], [1], [0, 0, 1, 1], [], []>} : vector<8x128xf32>, vector<128x128xf32>, vector<8x128xf32> -> vector<8x128xf32>
    %c0_15 = arith.constant 0 : index
    %c0_16 = arith.constant 0 : index
    %17 = vector.load %arg7[%c0_15, %c0_16] : memref<1x128xf32, #tpu.memory_space<vmem>>, vector<1x128xf32>
    %18 = vector.broadcast %17 : vector<1x128xf32> to vector<8x128xf32>
    %19 = arith.addf %16, %18 : vector<8x128xf32>
    %cst_17 = arith.constant dense<0xFF800000> : vector<8xf32>
    %20 = vector.multi_reduction <maximumf>, %19, %cst_17 [1] : vector<8x128xf32> to vector<8xf32>
    %21 = vector.shape_cast %20 : vector<8xf32> to vector<8x1xf32>
    %22 = vector.broadcast %21 : vector<8x1xf32> to vector<8x128xf32>
    %23 = arith.subf %19, %22 : vector<8x128xf32>
    %24 = math.exp %23 : vector<8x128xf32>
    %cst_18 = arith.constant dense<0.000000e+00> : vector<8xf32>
    %25 = vector.multi_reduction <add>, %24, %cst_18 [1] : vector<8x128xf32> to vector<8xf32>
    %26 = vector.shape_cast %25 : vector<8xf32> to vector<8x1xf32>
    %27 = vector.broadcast %21 : vector<8x1xf32> to vector<8x128xf32>
    %28 = arith.subf %19, %27 : vector<8x128xf32>
    %29 = math.log %26 : vector<8x1xf32>
    %30 = vector.broadcast %29 : vector<8x1xf32> to vector<8x128xf32>
    %31 = arith.subf %28, %30 : vector<8x128xf32>
    %c0_19 = arith.constant 0 : index
    %c0_20 = arith.constant 0 : index
    %32 = vector.load %arg8[%c0_19, %c0_20] : memref<8x128xf32, #tpu.memory_space<vmem>>, vector<8x128xf32>
    tpu.vector_store %arg8[%c0_19, %c0_20], %31 {strides = array<i32>} : memref<8x128xf32, #tpu.memory_space<vmem>>, vector<8x128xf32>,
    return
  }
  func.func @transform_0(%arg0: i32) -> (i32, i32) {
    %c0_i32 = arith.constant 0 : i32
    %c0_i32_0 = arith.constant 0 : i32
    return %arg0, %c0_i32 : i32, i32
  }
  func.func @transform_1(%arg0: i32) -> (i32, i32) {
    %c0_i32 = arith.constant 0 : i32
    %c0_i32_0 = arith.constant 0 : i32
    %c0_i32_1 = arith.constant 0 : i32
    return %c0_i32, %c0_i32_0 : i32, i32
  }
  func.func @transform_2(%arg0: i32) -> (i32, i32) {
    %c0_i32 = arith.constant 0 : i32
    %c0_i32_0 = arith.constant 0 : i32
    %c0_i32_1 = arith.constant 0 : i32
    return %c0_i32, %c0_i32_0 : i32, i32
  }
  func.func @transform_3(%arg0: i32) -> (i32, i32) {
    %c0_i32 = arith.constant 0 : i32
    %c0_i32_0 = arith.constant 0 : i32
    %c0_i32_1 = arith.constant 0 : i32
    return %c0_i32, %c0_i32_0 : i32, i32
  }
  func.func @transform_4(%arg0: i32) -> (i32, i32) {
    %c0_i32 = arith.constant 0 : i32
    %c0_i32_0 = arith.constant 0 : i32
    %c0_i32_1 = arith.constant 0 : i32
    return %c0_i32, %c0_i32_0 : i32, i32
  }
  func.func @transform_5(%arg0: i32) -> (i32, i32) {
    %c0_i32 = arith.constant 0 : i32
    %c0_i32_0 = arith.constant 0 : i32
    %c0_i32_1 = arith.constant 0 : i32
    return %c0_i32, %c0_i32_0 : i32, i32
  }
  func.func @transform_6(%arg0: i32) -> (i32, i32) {
    %c0_i32 = arith.constant 0 : i32
    %c0_i32_0 = arith.constant 0 : i32
    %c0_i32_1 = arith.constant 0 : i32
    return %c0_i32, %c0_i32_0 : i32, i32
  }
  func.func @transform_7(%arg0: i32) -> (i32, i32) {
    %c0_i32 = arith.constant 0 : i32
    %c0_i32_0 = arith.constant 0 : i32
    return %arg0, %c0_i32 : i32, i32
  }
}

</mosaic_0001>

<bundles_post_ra>
// kernel: mnist_ffnn_forward.1
= control target key start
LH: loop header
LB: loop body
LE: loop exit
PB: predicated region body
PF: predicated region fallthrough
CT: control target
= control target key end

     0   :  { %12 = vsyncpa [#allocation3], 0  ;;  %s1266_s0 = inlined_call_operand.vmem [shape: f32[2,784], index: 0, kind: input, shape index: {}]   ;;  %s1267_s1 = inlined_call_operand.hbm [shape: f32[784,128], index: 1, kind: input, shape index: {}]   ;;  %s1268_s2 = inlined_call_operand.vmem [shape: f32[1,128], index: 2, kind: input, shape index: {}]   ;;  %s1269_s3 = inlined_call_operand.vmem [shape: f32[128,128], index: 3, kind: input, shape index: {}]   ;;  %s1270_s4 = inlined_call_operand.vmem [shape: f32[1,128], index: 4, kind: input, shape index: {}]   ;;  %s1271_s5 = inlined_call_operand.hbm [shape: f32[128,128], index: 5, kind: input, shape index: {}]   ;;  %s1272_s6 = inlined_call_operand.vmem [shape: f32[1,128], index: 6, kind: input, shape index: {}]   ;;  %s1273_s7 = inlined_call_operand.hbm [shape: f32[2,128], index: 7, kind: output, shape index: {}]  }
   0x1   :  { %13 = vsyncpa [#allocation6], 0 }
   0x2   :  { %14 = vsyncpa [#allocation4], 0  ;;  %s1068_s24 = smov [#allocation2]  }
   0x3   :  { %s22_s25 = sshll.u32 %s1068_s24, 4  ;;  %s23_s25 = int_to_ptr.vmem [resolvable:$true] %s22_s25 }
   0x4   :  { %s1010_s26 = scalar_lea.vmem %s23_s25, 12544  ;;  %p1015_p1 = scmp.lt.s32.totalorder %s23_s25, %s23_s25 }
   0x5   :  { %p1011_p0 = scmp.ne.s32.totalorder %s23_s25, %s1010_s26  ;;  %p1016_p2 = scmp.lt.s32.totalorder %s1010_s26, %s1010_s26 }
   0x7   :  { %p1017_p3 = por %p1016_p2, %p1015_p1 }
   0x9   :  { %p1018_p4 = pnand %p1017_p3, %p1011_p0 }
   0xb   :  { %1021 = shalt.err (!%p1018_p4)
}
   0xc   :  { %s1069_s27 = smov 128   ;;  %s1070_s28 = smov 8  }
   0xd   :  { %28 = dma.hbm_to_vmem [thread:$0]  %s1267_s1, 12544, %s23_s25, [#allocation3], %s1069_s27, %s1069_s27, %s1070_s28  }
   0xe   :  { %s1071_s8 = smov [#allocation5]  }
   0xf   :  { %s40_s9 = sshll.u32 %s1071_s8, 4  ;;  %s41_s9 = int_to_ptr.vmem [resolvable:$true] %s40_s9 }
  0x10   :  { %s1030_s10 = scalar_lea.vmem %s41_s9, 2048  ;;  %p1035_p6 = scmp.lt.s32.totalorder %s41_s9, %s41_s9 }
  0x11   :  { %p1031_p5 = scmp.ne.s32.totalorder %s41_s9, %s1030_s10  ;;  %p1036_p7 = scmp.lt.s32.totalorder %s1030_s10, %s1030_s10 }
  0x13   :  { %p1037_p8 = por %p1036_p7, %p1035_p6 }
  0x15   :  { %p1038_p9 = pnand %p1037_p8, %p1031_p5 }
  0x17   :  { %1041 = shalt.err (!%p1038_p9)
}
  0x18   :  { %46 = dma.hbm_to_vmem [thread:$0]  %s1271_s5, 2048, %s41_s9, [#allocation6], %s1069_s27, %s1069_s27, %s1070_s28  }
  0x19   :  { %1062 = dma.done.wait [#allocation3], 12544  }
  0x1a   :  { %1063 = vsyncadd [#allocation3], 4294954752 }
  0x1b   :  { %1064 = dma.done.wait [#allocation6], 2048  }
  0x1c   :  { %1065 = vsyncadd [#allocation6], 4294965248  ;;  %v94_v0 = vld [vmem:[#allocation2 + $0xf8] sm:$0xff]  ;;  %v93_v2 = vld [vmem:[#allocation2 + $0xf0] sm:$0xff]  ;;  %v1072_v27 = vmov 1983009808   ;;  %v183_v29 = vlaneseq }
  0x1d   :  { %v78_v1 = vld [vmem:[#allocation2 + $0x78] sm:$0xff]  ;;  %757 = vmatprep.subr.mxu0 %v94_v0  ;;  %v77_v4 = vld [vmem:[#allocation2 + $0x70] sm:$0xff]  ;;  %v92_v6 = vld [vmem:[#allocation2 + $0xe8] sm:$0xff]  ;;  %v181_v28 = vunpack.c.l.s4 %v1072_v27  ;;  %vm1074_vm0 = vmmov 0   ;;  %vm253_vm1 = vcmask 130048  }
  0x1e   :  { %v126_v3 = vld [vmem:[#allocation2 + $0x1f8] sm:$0xff]  ;;  %758 = vmatpush3.msra.mxu0 %v78_v1  ;;  %v125_v7 = vld [vmem:[#allocation2 + $0x1f0] sm:$0xff]  ;;  %v76_v8 = vld [vmem:[#allocation2 + $0x68] sm:$0xff]  ;;  %v184_v39 = vshrl.u32 %v183_v29, 7 }
  0x1f   :  { %v110_v5 = vld [vmem:[#allocation2 + $0x178] sm:$0xff]  ;;  %792 = vmatprep.subr.mxu1 %v126_v3  ;;  %759 = vmatprep.subr.mxu0 %v93_v2  ;;  %v109_v9 = vld [vmem:[#allocation2 + $0x170] sm:$0xff]  ;;  %v124_v10 = vld [vmem:[#allocation2 + $0x1e8] sm:$0xff]  ;;  %v182_v38 = vunpack.c.0.s8 %v181_v28 }
  0x20   :  { %793 = vmatpush3.msra.mxu1 %v110_v5  ;;  %760 = vmatpush3.msra.mxu0 %v77_v4  ;;  %v91_v11 = vld [vmem:[#allocation2 + $0xe0] sm:$0xff]  ;;  %v108_v12 = vld [vmem:[#allocation2 + $0x168] sm:$0xff]  ;;  %v90_v15 = vld [vmem:[#allocation2 + $0xd8] sm:$0xff] }
  0x21   :  { %794 = vmatprep.subr.mxu1 %v125_v7  ;;  %761 = vmatprep.subr.mxu0 %v92_v6  ;;  %v75_v13 = vld [vmem:[#allocation2 + $0x60] sm:$0xff]  ;;  %v74_v17 = vld [vmem:[#allocation2 + $0x58] sm:$0xff]  ;;  %v89_v19 = vld [vmem:[#allocation2 + $0xd0] sm:$0xff]  ;;  %v1124_v51 = vsub.s32 %v182_v38, %v184_v39 }
  0x22   :  { %795 = vmatpush3.msra.mxu1 %v109_v9  ;;  %v123_v14 = vld [vmem:[#allocation2 + $0x1e0] sm:$0xff]  ;;  %762 = vmatpush3.msra.mxu0 %v76_v8  ;;  %v122_v18 = vld [vmem:[#allocation2 + $0x1d8] sm:$0xff]  ;;  %v73_v21 = vld [vmem:[#allocation2 + $0x50] sm:$0xff] }
  0x23   :  { %796 = vmatprep.subr.mxu1 %v124_v10  ;;  %v107_v16 = vld [vmem:[#allocation2 + $0x160] sm:$0xff]  ;;  %763 = vmatprep.subr.mxu0 %v91_v11  ;;  %v106_v20 = vld [vmem:[#allocation2 + $0x158] sm:$0xff]  ;;  %v121_v22 = vld [vmem:[#allocation2 + $0x1d0] sm:$0xff] }
  0x24   :  { %797 = vmatpush3.msra.mxu1 %v108_v12  ;;  %764 = vmatpush3.msra.mxu0 %v75_v13  ;;  %v88_v23 = vld [vmem:[#allocation2 + $0xc8] sm:$0xff]  ;;  %v105_v24 = vld [vmem:[#allocation2 + $0x150] sm:$0xff]  ;;  %v87_v30 = vld [vmem:[#allocation2 + $0xc0] sm:$0xff] }
  0x25   :  { %798 = vmatprep.subr.mxu1 %v123_v14  ;;  %765 = vmatprep.subr.mxu0 %v90_v15  ;;  %v72_v25 = vld [vmem:[#allocation2 + $0x48] sm:$0xff]  ;;  %v71_v32 = vld [vmem:[#allocation2 + $0x40] sm:$0xff]  ;;  %v86_v34 = vld [vmem:[#allocation2 + $0xb8] sm:$0xff] }
  0x26   :  { %799 = vmatpush3.msra.mxu1 %v107_v16  ;;  %766 = vmatpush3.msra.mxu0 %v74_v17  ;;  %v120_v26 = vld [vmem:[#allocation2 + $0x1c8] sm:$0xff]  ;;  %v119_v33 = vld [vmem:[#allocation2 + $0x1c0] sm:$0xff]  ;;  %v70_v36 = vld [vmem:[#allocation2 + $0x38] sm:$0xff] }
  0x27   :  { %800 = vmatprep.subr.mxu1 %v122_v18  ;;  %767 = vmatprep.subr.mxu0 %v89_v19  ;;  %v104_v31 = vld [vmem:[#allocation2 + $0x148] sm:$0xff]  ;;  %v103_v35 = vld [vmem:[#allocation2 + $0x140] sm:$0xff]  ;;  %v118_v37 = vld [vmem:[#allocation2 + $0x1b8] sm:$0xff] }
  0x28   :  { %801 = vmatpush3.msra.mxu1 %v106_v20  ;;  %768 = vmatpush3.msra.mxu0 %v73_v21  ;;  %v85_v40 = vld [vmem:[#allocation2 + $0xb0] sm:$0xff]  ;;  %v102_v41 = vld [vmem:[#allocation2 + $0x138] sm:$0xff]  ;;  %v84_v43 = vld [vmem:[#allocation2 + $0xa8] sm:$0xff] }
  0x29   :  { %802 = vmatprep.subr.mxu1 %v121_v22  ;;  %769 = vmatprep.subr.mxu0 %v88_v23  ;;  %v69_v42 = vld [vmem:[#allocation2 + $0x30] sm:$0xff]  ;;  %v68_v45 = vld [vmem:[#allocation2 + $0x28] sm:$0xff]  ;;  %v83_v47 = vld [vmem:[#allocation2 + $0xa0] sm:$0xff] }
  0x2a   :  { %803 = vmatpush3.msra.mxu1 %v105_v24  ;;  %770 = vmatpush3.msra.mxu0 %v72_v25  ;;  %v117_v44 = vld [vmem:[#allocation2 + $0x1b0] sm:$0xff]  ;;  %v116_v48 = vld [vmem:[#allocation2 + $0x1a8] sm:$0xff]  ;;  %v67_v49 = vld [vmem:[#allocation2 + $0x20] sm:$0xff] }
  0x2b   :  { %804 = vmatprep.subr.mxu1 %v120_v26  ;;  %771 = vmatprep.subr.mxu0 %v87_v30  ;;  %v101_v46 = vld [vmem:[#allocation2 + $0x130] sm:$0xff]  ;;  %v100_v50 = vld [vmem:[#allocation2 + $0x128] sm:$0xff]  ;;  %v115_v52 = vld [vmem:[#allocation2 + $0x1a0] sm:$0xff]  ;;  %v1073_v30 = vmov 0.0  }
  0x2c   :  { %805 = vmatpush3.msra.mxu1 %v104_v31  ;;  %772 = vmatpush3.msra.mxu0 %v71_v32  ;;  %v986_v53 = vld [vmem:[%s1266_s0] ss:$14 sps:$4 sm:$0xff]   ;;  %v82_v54 = vld [vmem:[#allocation2 + $0x98] sm:$0xff]  ;;  %v990_v60 = vld [vmem:[%s1266_s0 + $0x4] ss:$14 sps:$4 sm:$0xff]  }
  0x2d   :  { %806 = vmatprep.subr.mxu1 %v119_v33  ;;  %773 = vmatprep.subr.mxu0 %v86_v34  ;;  %v99_v55 = vld [vmem:[#allocation2 + $0x120] sm:$0xff]  ;;  %v988_v56 = vld [vmem:[%s1266_s0 + $0x1c] ss:$14 sps:$4 sm:$0xff]   ;;  %v186_v59 = vrot.slane %v986_v53, %v1124_v51  ;;  %v81_v61 = vld [vmem:[#allocation2 + $0x90] sm:$0xff]  ;;  %v193_v8 = vrot.slane %v990_v60, %v1124_v51 }
  0x2e   :  { %807 = vmatpush3.msra.mxu1 %v103_v35  ;;  %774 = vmatpush3.msra.mxu0 %v70_v36  ;;  %v66_v57 = vld [vmem:[#allocation2 + $0x18] sm:$0xff]  ;;  %v200_v63 = vrot.slane %v988_v56, %v1124_v51  ;;  %v991_v0 = vld [vmem:[%s1266_s0 + $0x20] ss:$14 sps:$4 sm:$0xff]   ;;  %v995_v28 = vld [vmem:[%s1266_s0 + $0x24] ss:$14 sps:$4 sm:$0xff]  }
  0x2f   :  { %808 = vmatprep.subr.mxu1 %v118_v37  ;;  %775 = vmatprep.subr.mxu0 %v85_v40  ;;  %v114_v58 = vld [vmem:[#allocation2 + $0x198] sm:$0xff]  ;;  %v65_v1 = vld [vmem:[#allocation2 + $0x10] sm:$0xff]  ;;  %v80_v3 = vld [vmem:[#allocation2 + $0x88] sm:$0xff]  ;;  %v207_v9 = vrot.slane %v991_v0, %v1124_v51  ;;  %v1160_v36 = vrot.slane %v995_v28, %v1124_v51 }
  0x30   :  { %809 = vmatpush3.msra.mxu1 %v102_v41  ;;  %776 = vmatpush3.msra.mxu0 %v69_v42  ;;  %v98_v62 = vld [vmem:[#allocation2 + $0x118] sm:$0xff]  ;;  %v113_v2 = vld [vmem:[#allocation2 + $0x190] sm:$0xff]  ;;  %v64_v5 = vld [vmem:[#allocation2 + $0x8] sm:$0xff]  ;;  %v209_v7 = vcombine.high %v186_v59, %v200_v63  ;;  %v208_v13 = vcombine.low %v186_v59, %v200_v63 }
  0x31   :  { %810 = vmatprep.subr.mxu1 %v117_v44  ;;  %777 = vmatprep.subr.mxu0 %v84_v43  ;;  %v97_v4 = vld [vmem:[#allocation2 + $0x110] sm:$0xff]  ;;  %v112_v6 = vld [vmem:[#allocation2 + $0x188] sm:$0xff]  ;;  %v79_v10 = vld [vmem:[#allocation2 + $0x80] sm:$0xff]  ;;  %v211_v17 = vcombine.high %v193_v8, %v207_v9  ;;  %v210_v19 = vcombine.low %v193_v8, %v207_v9 }
  0x32   :  { %811 = vmatpush3.msra.mxu1 %v101_v46  ;;  %778 = vmatpush3.msra.mxu0 %v68_v45  ;;  %v63_v11 = vld [vmem:[#allocation2] sm:$0xff]  ;;  %v96_v12 = vld [vmem:[#allocation2 + $0x108] sm:$0xff]  ;;  %v158_v15 = vld [vmem:[#allocation2 + $0x2f8] sm:$0xff] }
  0x33   :  { %812 = vmatprep.subr.mxu1 %v116_v48  ;;  %779 = vmatprep.subr.mxu0 %v83_v47  ;;  %v111_v14 = vld [vmem:[#allocation2 + $0x180] sm:$0xff]  ;;  %v142_v18 = vld [vmem:[#allocation2 + $0x278] sm:$0xff]  ;;  %v157_v20 = vld [vmem:[#allocation2 + $0x2f0] sm:$0xff] }
  0x34   :  { %813 = vmatpush3.msra.mxu1 %v100_v50  ;;  %780 = vmatpush3.msra.mxu0 %v67_v49  ;;  %v95_v16 = vld [vmem:[#allocation2 + $0x100] sm:$0xff]  ;;  %v141_v21 = vld [vmem:[#allocation2 + $0x270] sm:$0xff]  ;;  %v156_v22 = vld [vmem:[#allocation2 + $0x2e8] sm:$0xff] }
  0x35   :  { %814 = vmatprep.subr.mxu1 %v115_v52  ;;  %781 = vmatprep.subr.mxu0 %v82_v54  ;;  %v140_v23 = vld [vmem:[#allocation2 + $0x268] sm:$0xff]  ;;  %v155_v24 = vld [vmem:[#allocation2 + $0x2e0] sm:$0xff]  ;;  %v154_v35 = vld [vmem:[#allocation2 + $0x2d8] sm:$0xff] }
  0x36   :  { %815 = vmatpush3.msra.mxu1 %v99_v55  ;;  %782 = vmatpush3.msra.mxu0 %v66_v57  ;;  %v992_v25 = vld [vmem:[%s1266_s0 + $0x8] ss:$14 sps:$4 sm:$0xff]   ;;  %v994_v26 = vld [vmem:[%s1266_s0 + $0xc] ss:$14 sps:$4 sm:$0x33]   ;;  %v159_v31 = vld [vmem:[#allocation2 + $0x300] sm:$0xff] }
  0x37   :  { %816 = vmatprep.subr.mxu1 %v114_v58  ;;  %783 = vmatprep.subr.mxu0 %v81_v61  ;;  %v160_v27 = vld [vmem:[#allocation2 + $0x308] sm:$0xff]  ;;  %v139_v32 = vld [vmem:[#allocation2 + $0x260] sm:$0xff]  ;;  %v1156_v33 = vrot.slane %v992_v25, %v1124_v51  ;;  %v229_v34 = vrot.slane %v994_v26, %v1124_v51  ;;  %v138_v38 = vld [vmem:[#allocation2 + $0x258] sm:$0xff] }
  0x38   :  { %817 = vmatpush3.msra.mxu1 %v98_v62  ;;  %784 = vmatpush3.msra.mxu0 %v65_v1  ;;  %v997_v29 = vld [vmem:[%s1266_s0 + $0x28] ss:$14 sps:$4 sm:$0x33]   ;;  %v151_v45 = vld [vmem:[#allocation2 + $0x2c0] sm:$0xff]  ;;  %v150_v47 = vld [vmem:[#allocation2 + $0x2b8] sm:$0xff] }
  0x39   :  { %818 = vmatprep.subr.mxu1 %v113_v2  ;;  %785 = vmatprep.subr.mxu0 %v80_v3  ;;  %v243_v37 = vrot.slane %v997_v29, %v1124_v51  ;;  %v153_v39 = vld [vmem:[#allocation2 + $0x2d0] sm:$0xff]  ;;  %v245_v40 = vcombine.high %v1156_v33, %v1160_v36  ;;  %v152_v43 = vld [vmem:[#allocation2 + $0x2c8] sm:$0xff]  ;;  %v135_v46 = vld [vmem:[#allocation2 + $0x240] sm:$0xff]  ;;  %v244_v63 = vcombine.low %v1156_v33, %v1160_v36 }
  0x3a   :  { %819 = vmatpush3.msra.mxu1 %v97_v4  ;;  %786 = vmatpush3.msra.mxu0 %v64_v5  ;;  %v137_v42 = vld [vmem:[#allocation2 + $0x250] sm:$0xff]  ;;  %v136_v44 = vld [vmem:[#allocation2 + $0x248] sm:$0xff]  ;;  %v134_v48 = vld [vmem:[#allocation2 + $0x238] sm:$0xff] }
  0x3b   :  { %820 = vmatprep.subr.mxu1 %v112_v6  ;;  %787 = vmatprep.subr.mxu0 %v79_v10  ;;  %v246_v41 = vcombine.low %v229_v34, %v243_v37  ;;  %v149_v49 = vld [vmem:[#allocation2 + $0x2b0] sm:$0xff]  ;;  %v148_v51 = vld [vmem:[#allocation2 + $0x2a8] sm:$0xff]  ;;  %v147_v53 = vld [vmem:[#allocation2 + $0x2a0] sm:$0xff] }
  0x3c   :  { %320 = vmatprep.mubr.f32.mxu0 %v209_v7  ;;  %788 = vmatpush3.msra.mxu0 %v63_v11  ;;  %v133_v50 = vld [vmem:[#allocation2 + $0x230] sm:$0xff]  ;;  %v132_v52 = vld [vmem:[#allocation2 + $0x228] sm:$0xff]  ;;  %v131_v54 = vld [vmem:[#allocation2 + $0x220] sm:$0xff] }
  0x3d   :  { %821 = vmatpush3.msra.mxu1 %v96_v12  ;;  %321 = vmatmul.mubr.f32.vlgmr.msra.gmra.mxu0 %v208_v13  ;;  %v146_v55 = vld [vmem:[#allocation2 + $0x298] sm:$0xff]  ;;  %v145_v57 = vld [vmem:[#allocation2 + $0x290] sm:$0xff]  ;;  %v144_v59 = vld [vmem:[#allocation2 + $0x288] sm:$0xff] }
  0x3e   :  { %822 = vmatprep.subr.mxu1 %v111_v14  ;;  %827 = vmatprep.subr.mxu0 %v158_v15  ;;  %v130_v56 = vld [vmem:[#allocation2 + $0x218] sm:$0xff]  ;;  %v129_v58 = vld [vmem:[#allocation2 + $0x210] sm:$0xff]  ;;  %v128_v60 = vld [vmem:[#allocation2 + $0x208] sm:$0xff] }
  0x3f   :  { %823 = vmatpush3.msra.mxu1 %v95_v16  ;;  %390 = vmatprep.mubr.f32.mxu1 %v211_v17  ;;  %v143_v61 = vld [vmem:[#allocation2 + $0x280] sm:$0xff]  ;;  %v552_v0 = vld [vmem:[%s1269_s3 + $0x78] sm:$0xff]  ;;  %v551_v1 = vld [vmem:[%s1269_s3 + $0x70] sm:$0xff] }
  0x40   :  { %828 = vmatpush3.msra.mxu0 %v142_v18  ;;  %391 = vmatmul.mubr.f32.vlgmr.msra.gmra.mxu1 %v210_v19  ;;  %v127_v62 = vld [vmem:[#allocation2 + $0x200] sm:$0xff]  ;;  %v550_v2 = vld [vmem:[%s1269_s3 + $0x68] sm:$0xff]  ;;  %v548_v4 = vld [vmem:[%s1269_s3 + $0x58] sm:$0xff] }
  0x41   :  { %829 = vmatprep.subr.mxu0 %v157_v20  ;;  %899 = vmatprep.subr.mxu1 %v1073_v30  ;;  %v549_v3 = vld [vmem:[%s1269_s3 + $0x60] sm:$0xff]  ;;  %v547_v5 = vld [vmem:[%s1269_s3 + $0x50] sm:$0xff]  ;;  %v546_v6 = vld [vmem:[%s1269_s3 + $0x48] sm:$0xff] }
  0x42   :  { %830 = vmatpush3.msra.mxu0 %v141_v21  ;;  %900 = vmatpush3.msra.mxu1 %v160_v27  ;;  %v545_v7 = vld [vmem:[%s1269_s3 + $0x40] sm:$0xff]  ;;  %v544_v8 = vld [vmem:[%s1269_s3 + $0x38] sm:$0xff]  ;;  %v543_v9 = vld [vmem:[%s1269_s3 + $0x30] sm:$0xff] }
  0x43   :  { %831 = vmatprep.subr.mxu0 %v156_v22  ;;  %901 = vmatprep.subr.mxu1 %v1073_v30  ;;  %v542_v10 = vld [vmem:[%s1269_s3 + $0x28] sm:$0xff]  ;;  %v541_v11 = vld [vmem:[%s1269_s3 + $0x20] sm:$0xff]  ;;  %v540_v12 = vld [vmem:[%s1269_s3 + $0x18] sm:$0xff] }
  0x44   :  { %832 = vmatpush3.msra.mxu0 %v140_v23  ;;  %902 = vmatpush3.msra.mxu1 %v159_v31  ;;  %v539_v13 = vld [vmem:[%s1269_s3 + $0x10] sm:$0xff]  ;;  %v538_v14 = vld [vmem:[%s1269_s3 + $0x8] sm:$0xff]  ;;  %v537_v15 = vld [vmem:[%s1269_s3] sm:$0xff] }
  0x45   :  { %833 = vmatprep.subr.mxu0 %v155_v24  ;;  %903 = vmatprep.mubr.msk.f32.mxu1 %vm1074_vm0, %v1073_v30  ;;  %v646_v16 = vld [vmem:[#allocation5 + $0x78] sm:$0xff]  ;;  %v645_v17 = vld [vmem:[#allocation5 + $0x70] sm:$0xff]  ;;  %v644_v18 = vld [vmem:[#allocation5 + $0x68] sm:$0xff] }
  0x46   :  { %834 = vmatpush3.msra.mxu0 %v139_v32  ;;  %906 = vmatprep.subr.mxu1 %v1073_v30  ;;  %v643_v19 = vld [vmem:[#allocation5 + $0x60] sm:$0xff]  ;;  %v642_v20 = vld [vmem:[#allocation5 + $0x58] sm:$0xff]  ;;  %v641_v21 = vld [vmem:[#allocation5 + $0x50] sm:$0xff] }
  0x47   :  { %835 = vmatprep.subr.mxu0 %v154_v35  ;;  %460 = vmatprep.mubr.f32.mxu0 %v245_v40  ;;  %v640_v22 = vld [vmem:[#allocation5 + $0x48] sm:$0xff]  ;;  %v639_v23 = vld [vmem:[#allocation5 + $0x40] sm:$0xff]  ;;  %v638_v24 = vld [vmem:[#allocation5 + $0x38] sm:$0xff] }
  0x48   :  { %836 = vmatpush3.msra.mxu0 %v138_v38  ;;  %904 = vmatmul.mubr.msk.f32.vlgmr.msra.gmra.mxu1 %vm253_vm1, %v246_v41  ;;  %v637_v25 = vld [vmem:[#allocation5 + $0x30] sm:$0xff]  ;;  %v636_v26 = vld [vmem:[#allocation5 + $0x28] sm:$0xff]  ;;  %v635_v27 = vld [vmem:[#allocation5 + $0x20] sm:$0xff] }
  0x49   :  { %837 = vmatprep.subr.mxu0 %v153_v39  ;;  %938 = vmatprep.mubr.msk.f32.mxu1 %vm1074_vm0, %v1073_v30  ;;  %v634_v28 = vld [vmem:[#allocation5 + $0x18] sm:$0xff]  ;;  %v753_v37 = vld [vmem:[%s1268_s2] ss:$0 sm:$0xff] }
  0x4a   :  { %838 = vmatpush3.msra.mxu0 %v137_v42  ;;  %907 = vmatpush3.msra.mxu1 %v552_v0 }
  0x4b   :  { %839 = vmatprep.subr.mxu0 %v152_v43  ;;  %908 = vmatprep.subr.mxu1 %v1073_v30 }
  0x4c   :  { %840 = vmatpush3.msra.mxu0 %v136_v44  ;;  %909 = vmatpush3.msra.mxu1 %v551_v1 }
  0x4d   :  { %841 = vmatprep.subr.mxu0 %v151_v45  ;;  %910 = vmatprep.subr.mxu1 %v1073_v30 }
  0x4e   :  { %842 = vmatpush3.msra.mxu0 %v135_v46  ;;  %911 = vmatpush3.msra.mxu1 %v550_v2 }
  0x4f   :  { %843 = vmatprep.subr.mxu0 %v150_v47  ;;  %912 = vmatprep.subr.mxu1 %v1073_v30  ;;  %v633_v47 = vld [vmem:[#allocation5 + $0x10] sm:$0xff] }
  0x50   :  { %844 = vmatpush3.msra.mxu0 %v134_v48  ;;  %913 = vmatpush3.msra.mxu1 %v549_v3  ;;  %v632_v48 = vld [vmem:[#allocation5 + $0x8] sm:$0xff] }
  0x51   :  { %845 = vmatprep.subr.mxu0 %v149_v49  ;;  %914 = vmatprep.subr.mxu1 %v1073_v30  ;;  %v631_v49 = vld [vmem:[#allocation5] sm:$0xff] }
  0x52   :  { %846 = vmatpush3.msra.mxu0 %v133_v50  ;;  %915 = vmatpush3.msra.mxu1 %v548_v4  ;;  %v755_v50 = vld [vmem:[%s1270_s4] ss:$0 sm:$0xff] }
  0x53   :  { %847 = vmatprep.subr.mxu0 %v148_v51  ;;  %916 = vmatprep.subr.mxu1 %v1073_v30 }
  0x54   :  { %848 = vmatpush3.msra.mxu0 %v132_v52  ;;  %917 = vmatpush3.msra.mxu1 %v547_v5 }
  0x55   :  { %849 = vmatprep.subr.mxu0 %v147_v53  ;;  %918 = vmatprep.subr.mxu1 %v1073_v30 }
  0x56   :  { %850 = vmatpush3.msra.mxu0 %v131_v54  ;;  %919 = vmatpush3.msra.mxu1 %v546_v6 }
  0x57   :  { %851 = vmatprep.subr.mxu0 %v146_v55  ;;  %920 = vmatprep.subr.mxu1 %v1073_v30  ;;  %v756_v55 = vld [vmem:[%s1272_s6] ss:$0 sm:$0xff] }
  0x58   :  { %852 = vmatpush3.msra.mxu0 %v130_v56  ;;  %921 = vmatpush3.msra.mxu1 %v545_v7 }
  0x59   :  { %853 = vmatprep.subr.mxu0 %v145_v57  ;;  %922 = vmatprep.subr.mxu1 %v1073_v30 }
  0x5a   :  { %854 = vmatpush3.msra.mxu0 %v129_v58  ;;  %923 = vmatpush3.msra.mxu1 %v544_v8 }
  0x5b   :  { %855 = vmatprep.subr.mxu0 %v144_v59  ;;  %924 = vmatprep.subr.mxu1 %v1073_v30 }
  0x5c   :  { %856 = vmatpush3.msra.mxu0 %v128_v60  ;;  %925 = vmatpush3.msra.mxu1 %v543_v9 }
  0x5d   :  { %857 = vmatprep.subr.mxu0 %v143_v61  ;;  %926 = vmatprep.subr.mxu1 %v1073_v30 }
  0x5e   :  { %858 = vmatpush3.msra.mxu0 %v127_v62  ;;  %927 = vmatpush3.msra.mxu1 %v542_v10 }
  0x5f   :  { %461 = vmatmul.mubr.f32.vlgmr.msra.gmra.mxu0 %v244_v63  ;;  %941 = vmatprep.subr.mxu0 %v1073_v30 }
  0x60   :  { %973 = vmatprep.mubr.msk.f32.mxu0 %vm1074_vm0, %v1073_v30  ;;  %928 = vmatprep.subr.mxu1 %v1073_v30 }
  0x61   :  { %929 = vmatpush3.msra.mxu1 %v541_v11  ;;  %942 = vmatpush3.msra.mxu0 %v646_v16 }
  0x62   :  { %930 = vmatprep.subr.mxu1 %v1073_v30  ;;  %943 = vmatprep.subr.mxu0 %v1073_v30 }
  0x63   :  { %931 = vmatpush3.msra.mxu1 %v540_v12  ;;  %944 = vmatpush3.msra.mxu0 %v645_v17 }
  0x64   :  { %932 = vmatprep.subr.mxu1 %v1073_v30  ;;  %945 = vmatprep.subr.mxu0 %v1073_v30 }
  0x65   :  { %933 = vmatpush3.msra.mxu1 %v539_v13  ;;  %946 = vmatpush3.msra.mxu0 %v644_v18 }
  0x66   :  { %934 = vmatprep.subr.mxu1 %v1073_v30  ;;  %947 = vmatprep.subr.mxu0 %v1073_v30 }
  0x67   :  { %935 = vmatpush3.msra.mxu1 %v538_v14  ;;  %948 = vmatpush3.msra.mxu0 %v643_v19 }
  0x68   :  { %936 = vmatprep.subr.mxu1 %v1073_v30  ;;  %949 = vmatprep.subr.mxu0 %v1073_v30 }
  0x69   :  { %937 = vmatpush3.msra.mxu1 %v537_v15  ;;  %950 = vmatpush3.msra.mxu0 %v642_v20 }
  0x6a   :  { %951 = vmatprep.subr.mxu0 %v1073_v30 }
  0x6b   :  { %952 = vmatpush3.msra.mxu0 %v641_v21 }
  0x6c   :  { %953 = vmatprep.subr.mxu0 %v1073_v30 }
  0x6d   :  { %954 = vmatpush3.msra.mxu0 %v640_v22 }
  0x6e   :  { %955 = vmatprep.subr.mxu0 %v1073_v30 }
  0x6f   :  { %956 = vmatpush3.msra.mxu0 %v639_v23 }
  0x70   :  { %957 = vmatprep.subr.mxu0 %v1073_v30 }
  0x71   :  { %958 = vmatpush3.msra.mxu0 %v638_v24 }
  0x72   :  { %959 = vmatprep.subr.mxu0 %v1073_v30 }
  0x73   :  { %960 = vmatpush3.msra.mxu0 %v637_v25 }
  0x74   :  { %961 = vmatprep.subr.mxu0 %v1073_v30 }
  0x75   :  { %962 = vmatpush3.msra.mxu0 %v636_v26 }
  0x76   :  { %963 = vmatprep.subr.mxu0 %v1073_v30 }
  0x77   :  { %964 = vmatpush3.msra.mxu0 %v635_v27 }
  0x78   :  { %965 = vmatprep.subr.mxu0 %v1073_v30 }
  0x79   :  { %966 = vmatpush3.msra.mxu0 %v634_v28 }
  0x7a   :  { %967 = vmatprep.subr.mxu0 %v1073_v30 }
  0x7b   :  { %968 = vmatpush3.msra.mxu0 %v633_v47 }
  0x7c   :  { %969 = vmatprep.subr.mxu0 %v1073_v30 }
  0x7d   :  { %970 = vmatpush3.msra.mxu0 %v632_v48 }
  0x7e   :  { %971 = vmatprep.subr.mxu0 %v1073_v30 }
  0x7f   :  { %972 = vmatpush3.msra.mxu0 %v631_v49 }
  0xfd   :  { %v789_v34 = vpop.f32.mrf.mxu0 }
  0xff   :  { %v790_v35 = vpop.f32.mrf.mxu0 }
 0x100   :  { %v824_v29 = vpop.f32.mrf.mxu1  ;;  %v791_v36 = vadd.f32 %v790_v35, %v789_v34 }
 0x102   :  { %v825_v31 = vpop.f32.mrf.mxu1  ;;  %v323_v38 = vadd.f32 %v791_v36, %v753_v37 }
 0x103   :  { %v826_v39 = vadd.f32 %v825_v31, %v824_v29 }
 0x105   :  { %v393_v42 = vadd.f32 %v826_v39, %v323_v38 }
 0x108   :  { %v532_v32 = vpop.f32.mrf.mxu1 }
 0x10a   :  { %v905_v33 = vpop.f32.mrf.mxu1 }
 0x11f   :  { %v859_v40 = vpop.f32.mrf.mxu0 }
 0x121   :  { %v860_v41 = vpop.f32.mrf.mxu0 }
 0x122   :  { %v861_v43 = vadd.f32 %v860_v41, %v859_v40 }
 0x124   :  { %v463_v44 = vadd.f32 %v861_v43, %v393_v42 }
 0x126   :  { %v533_v45 = vadd.f32 %v532_v32, %v463_v44 }
 0x128   :  { %v536_v46 = vmax.f32 %v533_v45, 0.0 }
 0x12a   :  { %939 = vmatmul.mubr.f32.vlgmr.msra.gmra.mxu1 %v536_v46 }
 0x1ea   :  { %v626_v51 = vpop.f32.mrf.mxu1 }
 0x1eb   :  { %v627_v52 = vadd.f32 %v755_v50, %v626_v51 }
 0x1ec   :  { %v940_v53 = vpop.f32.mrf.mxu1 }
 0x1ed   :  { %v630_v54 = vmax.f32 %v627_v52, 0.0 }
 0x1ef   :  { %974 = vmatmul.mubr.f32.vlgmr.msra.gmra.mxu0 %v630_v54 }
 0x2af   :  { %v720_v56 = vpop.f32.mrf.mxu0 }
 0x2b0   :  { %v721_v57 = vadd.f32 %v756_v55, %v720_v56 }
 0x2b1   :  { %v975_v58 = vpop.f32.mrf.mxu0 }
 0x2b2   :  { %724 = vmax.xlane.f32.xlu0 %v721_v57 }
 0x33b   :  { %v725_v30 = vpop.xlane.xlu0 %724 }
 0x33c   :  { %v726_v59 = vsub.f32 %v721_v57, %v725_v30 }
 0x33e   :  { %v727_v60 = vmul.f32 1.442695, %v726_v59 }
 0x340   :  { %998 = vpow2.f32 %v727_v60 }
 0x34d   :  { %v999_v61 = vpop.eup %998 }
 0x34e   :  { %729 = vadd.xlane.f32.xlu0 %v999_v61 }
 0x3d7   :  { %v730_v62 = vpop.xlane.xlu0 %729 }
 0x3d8   :  { %1000 = vlog2.f32 %v730_v62 }
 0x3e5   :  { %v1001_v63 = vpop.eup %1000 }
 0x3e6   :  { %v732_v0 = vmul.f32 0.6931472, %v1001_v63 }
 0x3e8   :  { %v733_v1 = vsub.f32 %v726_v59, %v732_v0 }
 0x3ea   :  { %734 = vst [vmem:[#allocation7] sm:$0xff] %v733_v1 }
 0x3eb   :  { %739 = vsyncadd [#allocation4], 96  ;;  %s1075_s4 = smov [#allocation7]  }
 0x3ec   :  { %s740_s1 = sshll.u32 %s1075_s4, 4  ;;  %s741_s1 = int_to_ptr.vmem [resolvable:$true] %s740_s1 }
 0x3ed   :  { %s1042_s6 = scalar_lea.vmem %s741_s1, 32  ;;  %s1046_s5 = scalar_lea.vmem %s741_s1, 128 }
 0x3ee   :  { %p1043_p10 = scmp.ne.s32.totalorder %s741_s1, %s1042_s6  ;;  %p1047_p11 = scmp.lt.s32.totalorder %s741_s1, %s741_s1 }
 0x3ef   :  { %p1048_p12 = scmp.lt.s32.totalorder %s1046_s5, %s1042_s6 }
 0x3f1   :  { %p1049_p13 = por %p1048_p12, %p1047_p11 }
 0x3f3   :  { %p1050_p0 = pnand %p1049_p13, %p1043_p10 }
 0x3f5   :  { %1053 = shalt.err (!%p1050_p0)
}
 0x3f6   :  { %s1076_s13 = smov 32   ;;  %s1077_s14 = smov 2  }
 0x3f7   :  { %746 = dma.vmem_to_hbm [thread:$0]  %s741_s1, 32, %s1273_s7, [#allocation4], %s1076_s13, %s1076_s13, %s1077_s14  }
 0x3f8   :  { %1066 = dma.done.wait [#allocation4], 128  }
 0x3f9   :  { %1067 = vsyncadd [#allocation4], 4294967168 }
 0x3fa   :  { %750 = vsyncpa [#allocation3], 1 }
 0x3fb   :  { %751 = vsyncpa [#allocation6], 1 }
 0x3fc   :  { %752 = vsyncpa [#allocation4], 1 }

</bundles_post_ra>
